<compile_context>
chip_gen: v7x
topology: tpu7x:2x2x1
jax: 0.10.0
libtpu: 0.0.40
codegen_flags: <defaults>
</compile_context>

<pallas_src>
import jax
import jax.numpy as jnp
from jax.experimental import pallas as pl
from jax.experimental.pallas import tpu as pltpu


def _encoder_kernel(ids_ref, tnt_ref, out_ref):
    # ids_ref : (S, tb)  int32   — sampled POI-type ids, batch on the lane axis
    # tnt_ref : (D, V)   float32 — L2-normalized embedding table, transposed
    # out_ref : (D, tb)  float   — normalized aggregates, batch on the lane axis
    S, tb = ids_ref.shape
    D, V = tnt_ref.shape

    ids = ids_ref[...]                                          # (S, tb)
    v_iota = jax.lax.broadcasted_iota(jnp.int32, (V, tb), 0)    # (V, tb)

    # hist[v, b] = #{s : ids[s, b] == v}.  S is tiny and static, so a short
    # static loop keeps only a (V, tb) value live (no 3D one-hot).
    hist = jnp.zeros((V, tb), jnp.float32)
    for s in range(S):
        hist = hist + (ids[s:s + 1, :] == v_iota).astype(jnp.float32)

    # mean_s normalize(table[ids[s, b]])  ∝  table_n.T @ hist   (MXU, N = tb).
    # The 1/S factor is dropped: the final L2 normalization is scale-invariant.
    aggs = jnp.dot(tnt_ref[...], hist,
                   preferred_element_type=jnp.float32)          # (D, tb)

    # Final L2 normalization over D (reference has no eps; keep it).
    inv = jax.lax.rsqrt(jnp.sum(aggs * aggs, axis=0, keepdims=True))  # (1, tb)
    out_ref[...] = (aggs * inv).astype(out_ref.dtype)


def point_feature_encoder(feature_ids: jax.Array,
                          feature_embedding: jax.Array,
                          *, tb: int | None = None) -> jax.Array:
    """feature_ids: (B, S) int, feature_embedding: (V, D) -> (B, D)."""
    B, S = feature_ids.shape
    V, D = feature_embedding.shape

    # ---- layout plumbing + tiny hoisted prep (O(B*S) / O(V*D)) ------------
    # Batch goes on the lane axis: ids as (S, B), output as (D, B).
    ids_t = feature_ids.astype(jnp.int32).T                      # (S, B)
    # L2-normalize the table rows ONCE (tiny op) and transpose to (D, V) so
    # the in-kernel matmul directly yields a lane-dense (D, tb) block.
    tab = feature_embedding.astype(jnp.float32)
    tab_n = tab * jax.lax.rsqrt(jnp.sum(tab * tab, axis=-1, keepdims=True))
    tab_n_t = tab_n.T                                            # (D, V)

    # ---- batch tile: lane dim must be a multiple of 128 or the full extent.
    if tb is None:
        # Big tiles amortize the ~0.35us/step overhead; at very large B keep
        # >= 2 grid steps so the "parallel" axis can feed both v7x cores.
        tb = B if B <= 2048 else 2048
    tb = min(tb, B)
    if tb != B and tb % 128 != 0:
        tb = B if B <= 128 else max(128, (tb // 128) * 128)
    grid = (pl.cdiv(B, tb),)

    out_t = pl.pallas_call(
        _encoder_kernel,
        out_shape=jax.ShapeDtypeStruct((D, B), feature_embedding.dtype),
        grid_spec=pltpu.PrefetchScalarGridSpec(
            num_scalar_prefetch=0,
            grid=grid,
            in_specs=[
                pl.BlockSpec((S, tb), lambda i: (0, i)),   # ids tile (lanes=batch)
                pl.BlockSpec((D, V), lambda i: (0, 0)),    # normalized table, resident
            ],
            out_specs=pl.BlockSpec((D, tb), lambda i: (0, i)),
        ),
        compiler_params=pltpu.CompilerParams(
            dimension_semantics=("parallel",),
            vmem_limit_bytes=32 * 1024 * 1024,
        ),
    )(ids_t, tab_n_t)

    return out_t.T                                               # (B, D)


def reference(feature_ids: jax.Array, feature_embedding: jax.Array) -> jax.Array:
    embeds = feature_embedding[feature_ids]                       # (B, S, D)
    norm = jnp.linalg.norm(embeds, axis=2, keepdims=True)
    e_norm = embeds / norm
    aggs = jnp.mean(e_norm, axis=1)
    agg_norm = jnp.linalg.norm(aggs, axis=1, keepdims=True)
    return aggs / agg_norm


if __name__ == "__main__":
    # Small deterministic setup consistent with the module:
    #   batch B = 2, num_feature_sample S = 8, embed_dim D = 32, 20 POI types.
    # TODO(synk): pointset.pt_dict[pid].features is a host-side Python dict
    # lookup; it is represented here by a precomputed int32 id array.
    B, S, D = 2, 8, 32
    V = 20

    key = jax.random.PRNGKey(0)
    k_emb, k_ids, k_ids2, k_ids3 = jax.random.split(key, 4)

    feature_embedding = jax.random.normal(k_emb, (V, D), jnp.float32)
    feature_ids = jax.random.randint(k_ids, (B, S), 0, V)

    out = jax.block_until_ready(point_feature_encoder(feature_ids, feature_embedding))
    ref = reference(feature_ids, feature_embedding)
    assert out.shape == (B, D), out.shape
    assert jnp.allclose(out, ref, atol=1e-5, rtol=1e-5), (
        jnp.max(jnp.abs(out - ref)))

    # Medium batch, single-step grid (full-extent lane block).
    B2 = 16
    ids2 = jax.random.randint(k_ids2, (B2, S), 0, V)
    out2 = jax.block_until_ready(point_feature_encoder(ids2, feature_embedding))
    ref2 = reference(ids2, feature_embedding)
    assert out2.shape == (B2, D), out2.shape
    assert jnp.allclose(out2, ref2, atol=1e-5, rtol=1e-5), (
        jnp.max(jnp.abs(out2 - ref2)))

    # Multi-step, 128-aligned lane-tiled (pipelined, "parallel") grid path.
    B3 = 256
    ids3 = jax.random.randint(k_ids3, (B3, S), 0, V)
    out3 = jax.block_until_ready(
        point_feature_encoder(ids3, feature_embedding, tb=128))
    ref3 = reference(ids3, feature_embedding)
    assert out3.shape == (B3, D), out3.shape
    assert jnp.allclose(out3, ref3, atol=1e-5, rtol=1e-5), (
        jnp.max(jnp.abs(out3 - ref3)))

    print("KERNEL_OK")
</pallas_src>

<mosaic_0001>
module attributes {stable_mosaic.version = 11 : i64} {
  func.func @_encoder_kernel(%arg0: i32, %arg1: memref<8x2xi32, #tpu.memory_space<vmem>>, %arg2: memref<32x20xf32, #tpu.memory_space<vmem>>, %arg3: memref<32x2xf32, #tpu.memory_space<vmem>>) attributes {dimension_semantics = [#tpu.dimension_semantics<parallel>], iteration_bounds = array<i64: 1>, scalar_prefetch = 0 : i64, scratch_operands = 0 : i64, tpu.core_type = #tpu.core_type<tc>, window_params = [{transform_indices = @transform_0, window_bounds = array<i64: 8, 2>}, {pipeline_mode = #tpu.pipeline_mode<synchronous>, transform_indices = @transform_1, window_bounds = array<i64: 32, 20>}, {transform_indices = @transform_2, window_bounds = array<i64: 32, 2>}]} {
    %c0 = arith.constant 0 : index
    %c0_0 = arith.constant 0 : index
    %0 = vector.load %arg1[%c0, %c0_0] : memref<8x2xi32, #tpu.memory_space<vmem>>, vector<8x2xi32>
    %1 = tpu.iota {dimensions = array<i32: 0>} : vector<20x2xi32>
    %cst = arith.constant 0.000000e+00 : f32
    %2 = vector.broadcast %cst : f32 to vector<20x2xf32>
    %3 = vector.extract_strided_slice %0 {offsets = [0, 0], sizes = [1, 2], strides = [1, 1]} : vector<8x2xi32> to vector<1x2xi32>
    %4 = vector.broadcast %3 : vector<1x2xi32> to vector<20x2xi32>
    %5 = arith.cmpi eq, %4, %1 : vector<20x2xi32>
    %6 = arith.extui %5 : vector<20x2xi1> to vector<20x2xi32>
    %7 = arith.sitofp %6 : vector<20x2xi32> to vector<20x2xf32>
    %8 = arith.addf %2, %7 : vector<20x2xf32>
    %9 = vector.extract_strided_slice %0 {offsets = [1, 0], sizes = [1, 2], strides = [1, 1]} : vector<8x2xi32> to vector<1x2xi32>
    %10 = vector.broadcast %9 : vector<1x2xi32> to vector<20x2xi32>
    %11 = arith.cmpi eq, %10, %1 : vector<20x2xi32>
    %12 = arith.extui %11 : vector<20x2xi1> to vector<20x2xi32>
    %13 = arith.sitofp %12 : vector<20x2xi32> to vector<20x2xf32>
    %14 = arith.addf %8, %13 : vector<20x2xf32>
    %15 = vector.extract_strided_slice %0 {offsets = [2, 0], sizes = [1, 2], strides = [1, 1]} : vector<8x2xi32> to vector<1x2xi32>
    %16 = vector.broadcast %15 : vector<1x2xi32> to vector<20x2xi32>
    %17 = arith.cmpi eq, %16, %1 : vector<20x2xi32>
    %18 = arith.extui %17 : vector<20x2xi1> to vector<20x2xi32>
    %19 = arith.sitofp %18 : vector<20x2xi32> to vector<20x2xf32>
    %20 = arith.addf %14, %19 : vector<20x2xf32>
    %21 = vector.extract_strided_slice %0 {offsets = [3, 0], sizes = [1, 2], strides = [1, 1]} : vector<8x2xi32> to vector<1x2xi32>
    %22 = vector.broadcast %21 : vector<1x2xi32> to vector<20x2xi32>
    %23 = arith.cmpi eq, %22, %1 : vector<20x2xi32>
    %24 = arith.extui %23 : vector<20x2xi1> to vector<20x2xi32>
    %25 = arith.sitofp %24 : vector<20x2xi32> to vector<20x2xf32>
    %26 = arith.addf %20, %25 : vector<20x2xf32>
    %27 = vector.extract_strided_slice %0 {offsets = [4, 0], sizes = [1, 2], strides = [1, 1]} : vector<8x2xi32> to vector<1x2xi32>
    %28 = vector.broadcast %27 : vector<1x2xi32> to vector<20x2xi32>
    %29 = arith.cmpi eq, %28, %1 : vector<20x2xi32>
    %30 = arith.extui %29 : vector<20x2xi1> to vector<20x2xi32>
    %31 = arith.sitofp %30 : vector<20x2xi32> to vector<20x2xf32>
    %32 = arith.addf %26, %31 : vector<20x2xf32>
    %33 = vector.extract_strided_slice %0 {offsets = [5, 0], sizes = [1, 2], strides = [1, 1]} : vector<8x2xi32> to vector<1x2xi32>
    %34 = vector.broadcast %33 : vector<1x2xi32> to vector<20x2xi32>
    %35 = arith.cmpi eq, %34, %1 : vector<20x2xi32>
    %36 = arith.extui %35 : vector<20x2xi1> to vector<20x2xi32>
    %37 = arith.sitofp %36 : vector<20x2xi32> to vector<20x2xf32>
    %38 = arith.addf %32, %37 : vector<20x2xf32>
    %39 = vector.extract_strided_slice %0 {offsets = [6, 0], sizes = [1, 2], strides = [1, 1]} : vector<8x2xi32> to vector<1x2xi32>
    %40 = vector.broadcast %39 : vector<1x2xi32> to vector<20x2xi32>
    %41 = arith.cmpi eq, %40, %1 : vector<20x2xi32>
    %42 = arith.extui %41 : vector<20x2xi1> to vector<20x2xi32>
    %43 = arith.sitofp %42 : vector<20x2xi32> to vector<20x2xf32>
    %44 = arith.addf %38, %43 : vector<20x2xf32>
    %45 = vector.extract_strided_slice %0 {offsets = [7, 0], sizes = [1, 2], strides = [1, 1]} : vector<8x2xi32> to vector<1x2xi32>
    %46 = vector.broadcast %45 : vector<1x2xi32> to vector<20x2xi32>
    %47 = arith.cmpi eq, %46, %1 : vector<20x2xi32>
    %48 = arith.extui %47 : vector<20x2xi1> to vector<20x2xi32>
    %49 = arith.sitofp %48 : vector<20x2xi32> to vector<20x2xf32>
    %50 = arith.addf %44, %49 : vector<20x2xf32>
    %c0_1 = arith.constant 0 : index
    %c0_2 = arith.constant 0 : index
    %51 = vector.load %arg2[%c0_1, %c0_2] : memref<32x20xf32, #tpu.memory_space<vmem>>, vector<32x20xf32>
    %cst_3 = arith.constant dense<0.000000e+00> : vector<32x2xf32>
    %52 = tpu.matmul %51, %50, %cst_3 {dimension_numbers = #tpu.dot_dimension_numbers<[1], [0], [0], [1], [0, 0, 1, 1], [], []>} : vector<32x20xf32>, vector<20x2xf32>, vector<32x2xf32> -> vector<32x2xf32>
    %53 = arith.mulf %52, %52 : vector<32x2xf32>
    %cst_4 = arith.constant dense<0.000000e+00> : vector<2xf32>
    %54 = vector.multi_reduction <add>, %53, %cst_4 [0] : vector<32x2xf32> to vector<2xf32>
    %55 = vector.shape_cast %54 : vector<2xf32> to vector<1x2xf32>
    %56 = math.rsqrt %55 : vector<1x2xf32>
    %57 = vector.broadcast %56 : vector<1x2xf32> to vector<32x2xf32>
    %58 = arith.mulf %52, %57 : vector<32x2xf32>
    %c0_5 = arith.constant 0 : index
    %c0_6 = arith.constant 0 : index
    %59 = vector.load %arg3[%c0_5, %c0_6] : memref<32x2xf32, #tpu.memory_space<vmem>>, vector<32x2xf32>
    tpu.vector_store %arg3[%c0_5, %c0_6], %58 {strides = array<i32>} : memref<32x2xf32, #tpu.memory_space<vmem>>, vector<32x2xf32>,
    return
  }
  func.func @transform_0(%arg0: i32) -> (i32, i32) {
    %c0_i32 = arith.constant 0 : i32
    %c0_i32_0 = arith.constant 0 : i32
    return %c0_i32, %arg0 : i32, i32
  }
  func.func @transform_1(%arg0: i32) -> (i32, i32) {
    %c0_i32 = arith.constant 0 : i32
    %c0_i32_0 = arith.constant 0 : i32
    %c0_i32_1 = arith.constant 0 : i32
    return %c0_i32, %c0_i32_0 : i32, i32
  }
  func.func @transform_2(%arg0: i32) -> (i32, i32) {
    %c0_i32 = arith.constant 0 : i32
    %c0_i32_0 = arith.constant 0 : i32
    return %c0_i32, %arg0 : i32, i32
  }
}

</mosaic_0001>

<bundles_post_ra>
// kernel: tpu_custom_call.1
= control target key start
LH: loop header
LB: loop body
LE: loop exit
PB: predicated region body
PF: predicated region fallthrough
CT: control target
= control target key end

     0   :  { %v12_v0 = vlaneseq  ;;  %vm148_vm0 = vcmask 162816   ;;  %v340_v21 = vmov 0.0   ;;  %s469_s0 = inlined_call_operand.vmem [shape: s32[8,2], index: 0, kind: input, shape index: {}]   ;;  %s470_s1 = inlined_call_operand.vmem [shape: f32[32,20], index: 1, kind: input, shape index: {}]   ;;  %s471_s2 = inlined_call_operand.vmem [shape: f32[32,2], index: 2, kind: output, shape index: {}]  }
   0x1   :  { %v144_v1 = vld [vmem:[%s470_s1] sm:$0xff]  ;;  %v146_v3 = vld [vmem:[%s470_s1 + $0x10] sm:$0xff] }
   0x2   :  { %v359_v2 = vshrl.u32 %v12_v0, 7  ;;  %323 = vmatprep.mubr.msk.f32.mxu0 %vm148_vm0, %v144_v1  ;;  %v11_v4 = vld [vmem:[%s469_s0] sm:$0xff]  ;;  %326 = vmatprep.mubr.msk.f32.mxu1 %vm148_vm0, %v146_v3 }
   0x4   :  { %v370_v5 = vadd.s32 8, %v359_v2  ;;  %v18_v6 = vsub.s32 0, %v359_v2  ;;  %v34_v7 = vsub.s32 1, %v359_v2  ;;  %v50_v8 = vsub.s32 2, %v359_v2 }
   0x5   :  { %v66_v9 = vsub.s32 3, %v359_v2  ;;  %v82_v10 = vsub.s32 4, %v359_v2  ;;  %v98_v11 = vsub.s32 5, %v359_v2  ;;  %v114_v12 = vsub.s32 6, %v359_v2 }
   0x6   :  { %v19_v13 = vrot.slane %v11_v4, %v18_v6  ;;  %v35_v14 = vrot.slane %v11_v4, %v34_v7  ;;  %v379_v15 = vrot.slane %v11_v4, %v50_v8  ;;  %v130_v16 = vsub.s32 7, %v359_v2  ;;  %v145_v6 = vld [vmem:[%s470_s1 + $0x8] sm:$0xff]  ;;  %v147_v7 = vld [vmem:[%s470_s1 + $0x18] sm:$0xff] }
   0x7   :  { %v67_v17 = vrot.slane %v11_v4, %v66_v9  ;;  %v382_v18 = vrot.slane %v11_v4, %v82_v10  ;;  %v384_v19 = vrot.slane %v11_v4, %v98_v11  ;;  %v386_v20 = vrot.slane %v11_v4, %v114_v12 }
   0x8   :  { %vm20_vm1 = vcmp.eq.s32.totalorder %v19_v13, %v359_v2  ;;  %vm21_vm2 = vcmp.eq.s32.totalorder %v19_v13, %v370_v5  ;;  %vm36_vm3 = vcmp.eq.s32.totalorder %v35_v14, %v359_v2  ;;  %vm37_vm4 = vcmp.eq.s32.totalorder %v35_v14, %v370_v5 }
   0x9   :  { %v281_v22 = vsel %vm20_vm1, 1.0, %v340_v21  ;;  %v282_v23 = vsel %vm21_vm2, 1.0, %v340_v21  ;;  %v284_v24 = vsel %vm36_vm3, 1.0, %v340_v21  ;;  %v285_v25 = vsel %vm37_vm4, 1.0, %v340_v21 }
   0xa   :  { %v45_v26 = vadd.f32 %v284_v24, %v281_v22  ;;  %v46_v27 = vadd.f32 %v285_v25, %v282_v23  ;;  %vm52_vm5 = vcmp.eq.s32.totalorder %v379_v15, %v359_v2  ;;  %vm53_vm6 = vcmp.eq.s32.totalorder %v379_v15, %v370_v5 }
   0xb   :  { %v287_v28 = vsel %vm52_vm5, 1.0, %v340_v21  ;;  %v288_v29 = vsel %vm53_vm6, 1.0, %v340_v21  ;;  %vm68_vm7 = vcmp.eq.s32.totalorder %v67_v17, %v359_v2  ;;  %vm69_vm8 = vcmp.eq.s32.totalorder %v67_v17, %v370_v5 }
   0xc   :  { %v61_v30 = vadd.f32 %v287_v28, %v45_v26  ;;  %v62_v31 = vadd.f32 %v288_v29, %v46_v27  ;;  %v290_v32 = vsel %vm68_vm7, 1.0, %v340_v21  ;;  %v291_v33 = vsel %vm69_vm8, 1.0, %v340_v21 }
   0xd   :  { %vm84_vm9 = vcmp.eq.s32.totalorder %v382_v18, %v359_v2  ;;  %vm85_vm10 = vcmp.eq.s32.totalorder %v382_v18, %v370_v5  ;;  %vm100_vm11 = vcmp.eq.s32.totalorder %v384_v19, %v359_v2  ;;  %vm101_vm12 = vcmp.eq.s32.totalorder %v384_v19, %v370_v5 }
   0xe   :  { %v77_v34 = vadd.f32 %v290_v32, %v61_v30  ;;  %v78_v35 = vadd.f32 %v291_v33, %v62_v31  ;;  %v293_v36 = vsel %vm84_vm9, 1.0, %v340_v21  ;;  %v294_v37 = vsel %vm85_vm10, 1.0, %v340_v21 }
   0xf   :  { %v296_v38 = vsel %vm100_vm11, 1.0, %v340_v21  ;;  %v297_v39 = vsel %vm101_vm12, 1.0, %v340_v21  ;;  %vm116_vm13 = vcmp.eq.s32.totalorder %v386_v20, %v359_v2  ;;  %vm117_vm14 = vcmp.eq.s32.totalorder %v386_v20, %v370_v5 }
  0x10   :  { %v93_v40 = vadd.f32 %v293_v36, %v77_v34  ;;  %v94_v41 = vadd.f32 %v294_v37, %v78_v35  ;;  %v299_v42 = vsel %vm116_vm13, 1.0, %v340_v21  ;;  %v300_v43 = vsel %vm117_vm14, 1.0, %v340_v21 }
  0x11   :  { %v131_v44 = vrot.slane %v11_v4, %v130_v16  ;;  %v15_v45 = vadd.s32 16, %v359_v2  ;;  %vm161_vm10 = vcmask 1043456   ;;  %vm254_vm11 = vcmask 15360  }
  0x12   :  { %v109_v46 = vadd.f32 %v296_v38, %v93_v40  ;;  %v110_v47 = vadd.f32 %v297_v39, %v94_v41 }
  0x13   :  { %vm132_vm15 = vcmp.eq.s32.totalorder %v131_v44, %v359_v2  ;;  %vm133_vm1 = vcmp.eq.s32.totalorder %v131_v44, %v370_v5  ;;  %vm22_vm2 = vcmp.eq.s32.totalorder %v19_v13, %v15_v45  ;;  %vm38_vm3 = vcmp.eq.s32.totalorder %v35_v14, %v15_v45 }
  0x14   :  { %v125_v48 = vadd.f32 %v299_v42, %v109_v46  ;;  %v126_v49 = vadd.f32 %v300_v43, %v110_v47  ;;  %v302_v50 = vsel %vm132_vm15, 1.0, %v340_v21  ;;  %v303_v51 = vsel %vm133_vm1, 1.0, %v340_v21 }
  0x15   :  { %v283_v52 = vsel %vm22_vm2, 1.0, %v340_v21  ;;  %v286_v53 = vsel %vm38_vm3, 1.0, %v340_v21  ;;  %vm54_vm4 = vcmp.eq.s32.totalorder %v379_v15, %v15_v45  ;;  %vm70_vm5 = vcmp.eq.s32.totalorder %v67_v17, %v15_v45 }
  0x16   :  { %v141_v54 = vadd.f32 %v302_v50, %v125_v48  ;;  %v142_v55 = vadd.f32 %v303_v51, %v126_v49  ;;  %v47_v56 = vadd.f32 %v286_v53, %v283_v52  ;;  %v289_v57 = vsel %vm54_vm4, 1.0, %v340_v21 }
  0x17   :  { %v292_v58 = vsel %vm70_vm5, 1.0, %v340_v21  ;;  %vm86_vm6 = vcmp.eq.s32.totalorder %v382_v18, %v15_v45  ;;  %vm102_vm7 = vcmp.eq.s32.totalorder %v384_v19, %v15_v45  ;;  %vm118_vm8 = vcmp.eq.s32.totalorder %v386_v20, %v15_v45 }
  0x18   :  { %v329_v59 = vpack.c.bf16 %v142_v55, %v141_v54  ;;  %v63_v60 = vadd.f32 %v289_v57, %v47_v56  ;;  %v295_v61 = vsel %vm86_vm6, 1.0, %v340_v21  ;;  %v298_v63 = vsel %vm102_vm7, 1.0, %v340_v21 }
  0x19   :  { %vm134_vm9 = vcmp.eq.s32.totalorder %v131_v44, %v15_v45  ;;  %v301_v1 = vsel %vm118_vm8, 1.0, %v340_v21 }
  0x1a   :  { %330 = vmatprep.subr.bf16.mxu0 %v329_v59  ;;  %333 = vmatprep.subr.bf16.mxu1 %v329_v59  ;;  %v79_v62 = vadd.f32 %v292_v58, %v63_v60  ;;  %v304_v3 = vsel %vm134_vm9, 1.0, %v340_v21 }
  0x1b   :  { %332 = vmatpush3.bf16.msra.mxu0 %v329_v59  ;;  %335 = vmatpush3.bf16.msra.mxu1 %v329_v59 }
  0x1c   :  { %v95_v0 = vadd.f32 %v295_v61, %v79_v62 }
  0x1e   :  { %v111_v2 = vadd.f32 %v298_v63, %v95_v0 }
  0x20   :  { %v127_v4 = vadd.f32 %v301_v1, %v111_v2 }
  0x22   :  { %v143_v5 = vadd.f32 %v304_v3, %v127_v4 }
  0x24   :  { %321 = vmatprep.subr.msk.mxu0 %vm161_vm10, %v143_v5  ;;  %334 = vmatprep.subr.msk.mxu1 %vm161_vm10, %v143_v5 }
  0x25   :  { %322 = vmatpush3.msk.msra.mxu0 %vm161_vm10, %v143_v5  ;;  %336 = vmatpush3.msk.msra.mxu1 %vm161_vm10, %v143_v5 }
  0x26   :  { %324 = vmatmul.mubr.msk.f32.vlgmr.msra.gmra.mrb[0].mxu0 %vm148_vm0, %v145_v6  ;;  %327 = vmatmul.mubr.msk.f32.vlgmr.msra.gmra.mrb[0].mxu1 %vm148_vm0, %v147_v7 }
  0xf9   :  { %v325_v8 = vpop.f32.mrb[0].mxu0  ;;  %v328_v9 = vpop.f32.mrb[0].mxu1 }
  0xfa   :  { %v251_v10 = vmul.f32 %v325_v8, %v325_v8  ;;  %v231_v11 = vpop.f32.mrb[1].mxu0  ;;  %v241_v12 = vpop.f32.mrb[1].mxu1  ;;  %v253_v17 = vmul.f32 %v328_v9, %v328_v9 }
  0xfb   :  { %v250_v13 = vmul.f32 %v231_v11, %v231_v11  ;;  %v252_v14 = vmul.f32 %v241_v12, %v241_v12 }
  0xfc   :  { %v256_v15 = vsel %vm254_vm11, %v251_v10, 0.0  ;;  %v260_v21 = vsel %vm254_vm11, %v253_v17, 0.0 }
  0xfd   :  { %v255_v16 = vsel %vm254_vm11, %v250_v13, 0.0  ;;  %v258_v18 = vsel %vm254_vm11, %v252_v14, 0.0 }
  0xfe   :  { %v257_v19 = vadd.f32 %v256_v15, %v255_v16 }
 0x100   :  { %v259_v20 = vadd.f32 %v258_v18, %v257_v19 }
 0x102   :  { %v261_v22 = vadd.f32 %v260_v21, %v259_v20 }
 0x104   :  { %v262_v23 = vrot.slane %v261_v22, 4 }
 0x106   :  { %v263_v24 = vadd.f32 %v262_v23, %v261_v22 }
 0x108   :  { %v264_v25 = vrot.slane %v263_v24, 2 }
 0x10a   :  { %v265_v26 = vadd.f32 %v264_v25, %v263_v24 }
 0x10c   :  { %v266_v27 = vrot.slane %v265_v26, 1 }
 0x10e   :  { %v267_v28 = vadd.f32 %v266_v27, %v265_v26 }
 0x110   :  { %338 = vrsqrt.f32 %v267_v28 }
 0x11a   :  { %v339_v29 = vpop.eup %338 }
 0x11b   :  { %v269_v30 = vmul.f32 %v339_v29, %v231_v11  ;;  %v270_v31 = vmul.f32 %v339_v29, %v325_v8  ;;  %v271_v32 = vmul.f32 %v339_v29, %v241_v12  ;;  %v272_v33 = vmul.f32 %v339_v29, %v328_v9 }
 0x11d   :  { %273 = vst.msk [vmem:[%s471_s2] sm:$0xff] %vm254_vm11, %v269_v30  ;;  %274 = vst.msk [vmem:[%s471_s2 + $0x8] sm:$0xff] %vm254_vm11, %v270_v31 }
 0x11e   :  { %275 = vst.msk [vmem:[%s471_s2 + $0x10] sm:$0xff] %vm254_vm11, %v271_v32  ;;  %276 = vst.msk [vmem:[%s471_s2 + $0x18] sm:$0xff] %vm254_vm11, %v272_v33 }

</bundles_post_ra>
